<compile_context>
chip_gen: v6e
topology: v6e:2x2x1
jax: 0.10.0
libtpu: 0.0.40
codegen_flags: <defaults>
</compile_context>

<pallas_src>
from collections import deque

import numpy as np
import jax
import jax.numpy as jnp
from jax.experimental import pallas as pl
from jax.experimental.pallas import tpu as pltpu


LANE = 128      # vreg lane width
SUBLANE = 8     # f32 sublane count

# Largest tile in elements.  4 B in + 4 B out, double buffered => ~16 B/elem
# of VMEM; 512K elems -> 8 MiB, well under the scoped-VMEM defaults on
# v5e (16 MiB), v6e (32 MiB) and v7x (32 MiB of 64 MiB physical).
_MAX_TILE_ELEMS = 512 * 1024

# Below this many elements, a device launch + D2H round-trip costs far more
# than the host float64 path (which is also exactly the reference semantics).
_PALLAS_MIN_ELEMS = 1 << 14


# ---------------------------------------------------------------------------
# Pallas kernel: integer edge-cost computation  int32(100 * cost)
# ---------------------------------------------------------------------------
def _cost_scale_kernel(cost_ref, out_ref):
    # Cast inside the kernel (VALU slot has plenty of slack in a pure
    # scale/cast kernel), scale by 100, truncate toward zero.  XLA's
    # float->int convert truncates toward zero, matching Python int() for
    # both signs.
    # TODO(synk): the reference truncates in Python float64; f32 may differ
    # by 1 unit when 100*cost lands exactly on an integer boundary.
    x = cost_ref[...].astype(jnp.float32)
    out_ref[...] = (100.0 * x).astype(jnp.int32)


def _tile_sizes(rows, cols):
    """Largest (sublane, lane)-aligned tile that stays within the VMEM budget."""
    tile_c = cols if cols <= 8 * LANE else 8 * LANE            # <= 1024 lanes
    budget_r = max(1, _MAX_TILE_ELEMS // tile_c)
    if rows <= budget_r:
        tile_r = rows                                          # full dim: legal
    else:
        tile_r = max(SUBLANE, (budget_r // SUBLANE) * SUBLANE)
    return tile_r, tile_c


def scale_costs(cost_matrix):
    """int32(100 * cost) computed by a Pallas TPU kernel (lane-dense layout)."""
    cost_matrix = jnp.asarray(cost_matrix)
    U, T = cost_matrix.shape

    if T % LANE == 0:
        # Already lane-dense: keep the native (U, T) layout, no extra copy.
        x2d = cost_matrix
        rows, cols = U, T
        unpad = lambda o: o
    else:
        # Flatten + pad so the kernel stores to a (rows, 128) slab ->
        # unmasked full-width `vst` instead of masked partial stores.
        n = U * T
        rows = pl.cdiv(pl.cdiv(n, LANE), SUBLANE) * SUBLANE
        cols = LANE
        flat = jnp.pad(jnp.reshape(cost_matrix, (n,)), (0, rows * cols - n))
        x2d = jnp.reshape(flat, (rows, cols))
        unpad = lambda o: jnp.reshape(o, (rows * cols,))[:n].reshape(U, T)

    tile_r, tile_c = _tile_sizes(rows, cols)
    grid = (pl.cdiv(rows, tile_r), pl.cdiv(cols, tile_c))
    out_shape = jax.ShapeDtypeStruct((rows, cols), jnp.int32)

    if grid == (1, 1):
        # Small input: whole-array VMEM blocks, no grid/pipeline machinery.
        out2d = pl.pallas_call(_cost_scale_kernel, out_shape=out_shape)(x2d)
    else:
        out2d = pl.pallas_call(
            _cost_scale_kernel,
            out_shape=out_shape,
            grid=grid,
            in_specs=[pl.BlockSpec((tile_r, tile_c), lambda i, j: (i, j))],
            out_specs=pl.BlockSpec((tile_r, tile_c), lambda i, j: (i, j)),
            compiler_params=pltpu.CompilerParams(
                dimension_semantics=("parallel", "parallel")),
        )(x2d)
    return unpad(out2d)


def _host_int_costs(cost_np):
    """Exact parity with the reference's Python int(100*c): f64, trunc to 0."""
    return np.trunc(100.0 * cost_np.astype(np.float64)).astype(np.int64)


# ---------------------------------------------------------------------------
# Host-side min-cost max-flow (successive shortest paths with SPFA)
# ---------------------------------------------------------------------------
class _MinCostFlow:
    def __init__(self, n):
        self.n = n
        self.to = []
        self.cap = []
        self.cost = []
        self.nxt = []
        self.head = [-1] * n

    def add(self, u, v, cap, cost):
        eid = len(self.to)
        # forward edge
        self.to.append(v); self.cap.append(cap); self.cost.append(cost)
        self.nxt.append(self.head[u]); self.head[u] = eid
        # backward edge
        self.to.append(u); self.cap.append(0); self.cost.append(-cost)
        self.nxt.append(self.head[v]); self.head[v] = eid + 1
        return eid

    def solve(self, s, t):
        INF = float("inf")
        total_flow = 0
        total_cost = 0
        while True:
            dist = [INF] * self.n
            in_q = [False] * self.n
            prev_edge = [-1] * self.n
            dist[s] = 0
            dq = deque([s])
            in_q[s] = True
            while dq:
                u = dq.popleft()
                in_q[u] = False
                e = self.head[u]
                while e != -1:
                    v = self.to[e]
                    if self.cap[e] > 0 and dist[u] + self.cost[e] < dist[v]:
                        dist[v] = dist[u] + self.cost[e]
                        prev_edge[v] = e
                        if not in_q[v]:
                            dq.append(v)
                            in_q[v] = True
                    e = self.nxt[e]
            if dist[t] == INF:
                break
            # bottleneck along shortest path
            f = INF
            v = t
            while v != s:
                e = prev_edge[v]
                f = min(f, self.cap[e])
                v = self.to[e ^ 1]
            v = t
            while v != s:
                e = prev_edge[v]
                self.cap[e] -= f
                self.cap[e ^ 1] += f
                v = self.to[e ^ 1]
            total_flow += f
            total_cost += f * dist[t]
        return total_flow, total_cost

    def flow_on(self, eid):
        return self.cap[eid ^ 1]  # backward residual == pushed flow


# ---------------------------------------------------------------------------
# MinCostMaxFlow_Mask.forward equivalent
# ---------------------------------------------------------------------------
def min_cost_max_flow_mask_forward(cost_matrix, use_pallas=None):
    cost_np = np.asarray(jax.device_get(cost_matrix))
    U, T = cost_np.shape

    if use_pallas is None:
        use_pallas = cost_np.size >= _PALLAS_MIN_ELEMS
    if use_pallas:
        int_cost = np.asarray(jax.device_get(scale_costs(cost_matrix)))
    else:
        # Toy-sized matrices: exact host f64 path, no device round-trip.
        int_cost = _host_int_costs(cost_np)

    n_nodes = U + T + 2           # 0=source, 1..U uni, U+1..U+T target, U+T+1 sink
    S = n_nodes                   # super source (handles node supplies)
    K = n_nodes + 1               # super sink
    g = _MinCostFlow(n_nodes + 2)

    arc_list = []  # (tail, head, edge_id) in AddArc order (mirrors OR-Tools arc ids)

    # uni -> target arcs, capacity 1, cost int(100 * c)
    # TODO(synk): the reference indexes cost_matrix[uni_class][target_class]
    # which is out of bounds; the intended per-arc cost cost_matrix[i][j] is used.
    for i in range(U):
        for j in range(T):
            e = g.add(1 + i, 1 + U + j, 1, int(int_cost[i, j]))
            arc_list.append((1 + i, 1 + U + j, e))

    # source -> uni arcs
    for j in range(U):
        e = g.add(0, 1 + j, 1, 0)
        arc_list.append((0, 1 + j, e))

    # target -> sink arcs
    for i in range(T):
        cap = (U - T + 1) if i == T - 1 else 3
        e = g.add(1 + U + i, U + T + 1, cap, 0)
        arc_list.append((1 + U + i, U + T + 1, e))

    # node supplies -> connect to super source / super sink
    for node in range(n_nodes):
        if node == 0:
            sup = U
        elif node == U + T + 1:
            sup = -U + T - 1
        elif U < node < U + T:
            sup = -1
        else:
            sup = 0
        if sup > 0:
            g.add(S, node, sup, 0)
        elif sup < 0:
            g.add(node, K, -sup, 0)

    flow, _cost = g.solve(S, K)
    if flow != U:
        raise Exception("error")  # mirrors the reference's non-OPTIMAL branch

    src, tgt = [], []
    for (tail, head, eid) in arc_list:
        if tail != 0 and head != 1 + U + T and head != U + T:
            if g.flow_on(eid) > 0:
                src.append(tail - 1)
                tgt.append(head - 1 - U)
    return src, tgt


# ---------------------------------------------------------------------------
if __name__ == "__main__":
    key = jax.random.PRNGKey(0)
    uni_class, target_class = 8, 5
    cost_matrix = jax.random.uniform(
        key, (uni_class, target_class), dtype=jnp.float32)

    # Run the Pallas kernel once (the hot path for production-sized matrices)
    # and block on it.
    int_costs_dev = scale_costs(cost_matrix)
    jax.block_until_ready(int_costs_dev)

    # Sanity: kernel output matches the reference int(100*c) within 1 unit
    # (f32-vs-f64 truncation at exact integer boundaries is the only slack).
    ref_int = _host_int_costs(np.asarray(jax.device_get(cost_matrix)))
    assert np.all(
        np.abs(np.asarray(int_costs_dev).astype(np.int64) - ref_int) <= 1)

    # Full forward: at this toy size the integer costs come from the exact
    # host float64 path (no duplicate kernel launch / device round-trip).
    src, tgt = min_cost_max_flow_mask_forward(cost_matrix)
    assert len(src) == len(tgt) and len(src) > 0

    print("KERNEL_OK")
</pallas_src>

<mosaic_0001>
module attributes {stable_mosaic.version = 11 : i64} {
  func.func @_cost_scale_kernel(%arg0: memref<8x128xf32, #tpu.memory_space<vmem>>, %arg1: memref<8x128xi32, #tpu.memory_space<vmem>>) attributes {dimension_semantics = [], scalar_prefetch = 0 : i64, scratch_operands = 0 : i64, tpu.core_type = #tpu.core_type<tc>} {
    %c0 = arith.constant 0 : index
    %c0_0 = arith.constant 0 : index
    %0 = vector.load %arg0[%c0, %c0_0] : memref<8x128xf32, #tpu.memory_space<vmem>>, vector<8x128xf32>
    %cst = arith.constant 1.000000e+02 : f32
    %1 = vector.broadcast %cst : f32 to vector<8x128xf32>
    %2 = arith.mulf %1, %0 : vector<8x128xf32>
    %3 = arith.fptosi %2 : vector<8x128xf32> to vector<8x128xi32>
    %c0_1 = arith.constant 0 : index
    %c0_2 = arith.constant 0 : index
    %4 = vector.load %arg1[%c0_1, %c0_2] : memref<8x128xi32, #tpu.memory_space<vmem>>, vector<8x128xi32>
    tpu.vector_store %arg1[%c0_1, %c0_2], %3 {strides = array<i32>} : memref<8x128xi32, #tpu.memory_space<vmem>>, vector<8x128xi32>,
    return
  }
}

</mosaic_0001>

<bundles_post_ra>
// kernel: tpu_custom_call.1
= control target key start
LH: loop header
LB: loop body
LE: loop exit
PB: predicated region body
PF: predicated region fallthrough
CT: control target
= control target key end

     0   :  { %6 = vsyncpa [#allocation3], 0  ;;  %s106_s0 = inlined_call_operand.hbm [shape: f32[8,128], index: 0, kind: input, shape index: {}]   ;;  %s107_s1 = inlined_call_operand.hbm [shape: s32[8,128], index: 1, kind: output, shape index: {}]  }
   0x1   :  { %7 = vsyncpa [#allocation4], 0  ;;  %s88_s6 = smov [#allocation2]  }
   0x2   :  { %s14_s7 = sshll.u32 %s88_s6, 4  ;;  %s15_s7 = int_to_ptr.vmem [resolvable:$true] %s14_s7 }
   0x3   :  { %s52_s8 = scalar_lea.vmem %s15_s7, 128  ;;  %p57_p1 = scmp.lt.s32.totalorder %s15_s7, %s15_s7 }
   0x4   :  { %p53_p0 = scmp.ne.s32.totalorder %s15_s7, %s52_s8  ;;  %p58_p2 = scmp.lt.s32.totalorder %s52_s8, %s52_s8 }
   0x6   :  { %p59_p3 = por %p58_p2, %p57_p1 }
   0x8   :  { %p60_p4 = pnand %p59_p3, %p53_p0 }
   0xa   :  { %63 = shalt.err (!%p60_p4)
}
   0xb   :  { %17 = dma.hbm_to_vmem [thread:$0]  %s106_s0, 128, %s15_s7, [#allocation3]  }
   0xc   :  { %84 = dma.done.wait [#allocation3], 128  }
   0xd   :  { %85 = vsyncadd [#allocation3], 4294967168  ;;  %v21_v0 = vld [vmem:[#allocation2] sm:$0xff]  ;;  %s89_s11 = smov [#allocation5]  }
   0xe   :  { %v22_v1 = vmul.f32 100.0, %v21_v0  ;;  %s31_s12 = sshll.u32 %s89_s11, 4  ;;  %s32_s12 = int_to_ptr.vmem [resolvable:$true] %s31_s12 }
   0xf   :  { %s64_s13 = scalar_lea.vmem %s32_s12, 128  ;;  %p69_p6 = scmp.lt.s32.totalorder %s32_s12, %s32_s12 }
  0x10   :  { %v40_v2 = vtrunc.f32 %v22_v1  ;;  %p65_p5 = scmp.ne.s32.totalorder %s32_s12, %s64_s13  ;;  %p70_p7 = scmp.lt.s32.totalorder %s64_s13, %s64_s13 }
  0x12   :  { %v41_v3 = vcvt.f32.s32 %v40_v2  ;;  %p71_p8 = por %p70_p7, %p69_p6 }
  0x14   :  { %24 = vst [vmem:[#allocation5] sm:$0xff] %v41_v3  ;;  %p72_p9 = pnand %p71_p8, %p65_p5 }
  0x16   :  { %75 = shalt.err (!%p72_p9)
}
  0x17   :  { %34 = dma.vmem_to_hbm [thread:$0]  %s32_s12, 128, %s107_s1, [#allocation4]  }
  0x18   :  { %86 = dma.done.wait [#allocation4], 128  }
  0x19   :  { %87 = vsyncadd [#allocation4], 4294967168 }
  0x1a   :  { %38 = vsyncpa [#allocation3], 1 }
  0x1b   :  { %39 = vsyncpa [#allocation4], 1 }

</bundles_post_ra>
